<compile_context>
chip_gen: v7x
topology: tpu7x:2x2x1
jax: 0.10.0
libtpu: 0.0.40
codegen_flags: <defaults>
</compile_context>

<pallas_src>
import math

import jax
import jax.numpy as jnp
import numpy as np
from jax.experimental import pallas as pl
from jax.experimental.pallas import tpu as pltpu


def _rotary_kernel(cols_ref, out_ref):
    # out[p, q] = (block_base + p) * col_a[q] + col_b[q]
    # col_a[q] = group * inv_full[j], col_b[q] = g * inv_full[j] with
    # q = g*dim + j, so packed row p / lane q maps to logical row p*group + g.
    rb = out_ref.shape[0]
    base = pl.program_id(0) * rb
    # int32 iota (always supported by Mosaic) + one convert; the VPU work is
    # fully hidden under the output writeback DMA anyway.
    p = (jax.lax.broadcasted_iota(jnp.int32, out_ref.shape, 0) + base).astype(
        jnp.float32)
    out_ref[...] = (p * cols_ref[0:1, :] + cols_ref[1:2, :]).astype(out_ref.dtype)


def rotary_embedding_forward(max_seq_len, inv_freq, *, max_row_block=1024,
                             target_width=512, out_dtype=jnp.float32):
    """Returns the (max_seq_len, dim) rotary-frequency table, dim = 2*len(inv_freq)."""
    inv_freq = jnp.asarray(inv_freq, jnp.float32)
    half = inv_freq.shape[0]
    dim = 2 * half

    # ---- lane-dense packing geometry (all static Python ints) ----
    base_width = (dim * 128) // math.gcd(dim, 128)          # lcm(dim, 128)
    width = base_width
    while width * 2 <= max(target_width, base_width):       # widen by powers of 2
        width *= 2
    group = width // dim                                     # power of two

    # ---- hoisted grid-invariant constants: one (2, width) resident slab ----
    inv_full = jnp.concatenate([inv_freq, inv_freq])         # (dim,)
    tiled = jnp.tile(inv_full, group)                        # (width,)
    col_a = tiled * float(group)                             # exact (power-of-2 scale)
    g_ids = jnp.repeat(jnp.arange(group, dtype=jnp.float32), dim)
    col_b = g_ids * tiled
    cols = jnp.stack([col_a, col_b])                         # (2, width)

    # ---- row tiling ----
    packed_rows = pl.cdiv(max_seq_len, group)
    out_rows = ((packed_rows + 7) // 8) * 8                  # 8-sublane multiple only

    out_itemsize = jnp.dtype(out_dtype).itemsize
    bytes_per_row = width * out_itemsize
    # Cap so a double-buffered output tile stays well inside every generation's
    # default scoped VMEM (<= 4 MiB per buffer).
    vmem_cap_rows = max(8, ((4 * 1024 * 1024) // bytes_per_row) // 8 * 8)
    row_block = min(max_row_block, vmem_cap_rows, out_rows)
    row_block = max(8, (row_block // 8) * 8)
    # Keep >= 2 grid steps when there is enough work so the "parallel" axis can
    # actually shard across both v7x TensorCores.
    if pl.cdiv(out_rows, row_block) < 2 and out_rows >= 16:
        row_block = max(8, ((out_rows // 2 + 7) // 8) * 8)
    n_blocks = pl.cdiv(out_rows, row_block)

    cost = pl.CostEstimate(
        flops=2 * out_rows * width,
        transcendentals=0,
        bytes_accessed=out_rows * width * out_itemsize + 2 * width * 4,
    )

    out = pl.pallas_call(
        _rotary_kernel,
        out_shape=jax.ShapeDtypeStruct((out_rows, width), out_dtype),
        grid=(n_blocks,),
        in_specs=[pl.BlockSpec((2, width), lambda i: (0, 0))],   # resident constants
        out_specs=pl.BlockSpec((row_block, width), lambda i: (i, 0)),
        compiler_params=pltpu.CompilerParams(
            dimension_semantics=("parallel",)),
        cost_estimate=cost,
    )(cols)

    # Unpack lane-dense slab back to (S, dim) and drop the trailing row padding.
    return out.reshape(out_rows * group, dim)[:max_seq_len]


def rotary_embedding_reference(max_seq_len, inv_freq):
    """Pure-JAX reference mirroring the PyTorch module exactly."""
    inv_freq = jnp.asarray(inv_freq, jnp.float32)
    seq = jnp.arange(max_seq_len, dtype=jnp.float32)
    freqs = jnp.einsum("i,j->ij", seq, inv_freq)
    return jnp.concatenate([freqs, freqs], axis=-1)


def make_inv_freq(dim):
    # Matches: 1.0 / 10000 ** (torch.arange(0, dim, 2).float() / dim)
    return 1.0 / (10000.0 ** (jnp.arange(0, dim, 2, dtype=jnp.float32) / dim))


if __name__ == "__main__":
    # Module has no random inputs (inv_freq is a deterministic buffer); key kept
    # only to satisfy the deterministic-setup convention.
    _ = jax.random.PRNGKey(0)

    # Case 1: dim divides 128 -> packed path (width=512, group=16), tiny table.
    dim, max_seq_len = 32, 16
    inv_freq = make_inv_freq(dim)
    out = jax.block_until_ready(rotary_embedding_forward(max_seq_len, inv_freq))
    ref = rotary_embedding_reference(max_seq_len, inv_freq)
    np.testing.assert_allclose(np.asarray(out), np.asarray(ref), rtol=1e-6, atol=1e-6)

    # Case 2: 128 % dim != 0 and ragged seq length -> lcm packing (width=640, group=32).
    dim2, max_seq_len2 = 20, 50
    inv_freq2 = make_inv_freq(dim2)
    out2 = jax.block_until_ready(rotary_embedding_forward(max_seq_len2, inv_freq2))
    ref2 = rotary_embedding_reference(max_seq_len2, inv_freq2)
    np.testing.assert_allclose(np.asarray(out2), np.asarray(ref2), rtol=1e-6, atol=1e-6)

    # Case 3: larger table -> multiple grid steps (row-block split, 2 blocks).
    dim3, max_seq_len3 = 64, 4096
    inv_freq3 = make_inv_freq(dim3)
    out3 = jax.block_until_ready(rotary_embedding_forward(max_seq_len3, inv_freq3))
    ref3 = rotary_embedding_reference(max_seq_len3, inv_freq3)
    np.testing.assert_allclose(np.asarray(out3), np.asarray(ref3), rtol=1e-6, atol=1e-6)

    # Case 4: optional bf16 output (semantics-changing, gated behind the flag).
    out4 = jax.block_until_ready(
        rotary_embedding_forward(128, inv_freq3, out_dtype=jnp.bfloat16))
    ref4 = rotary_embedding_reference(128, inv_freq3)
    np.testing.assert_allclose(np.asarray(out4, dtype=np.float32), np.asarray(ref4),
                               rtol=1e-2, atol=1e-2)

    print("KERNEL_OK")
</pallas_src>

<mosaic_0001>
module attributes {stable_mosaic.version = 11 : i64} {
  func.func @_rotary_kernel(%arg0: i32, %arg1: memref<2x512xf32, #tpu.memory_space<vmem>>, %arg2: memref<8x512xf32, #tpu.memory_space<vmem>>) attributes {dimension_semantics = [#tpu.dimension_semantics<parallel>], iteration_bounds = array<i64: 1>, scalar_prefetch = 0 : i64, scratch_operands = 0 : i64, tpu.core_type = #tpu.core_type<tc>, window_params = [{pipeline_mode = #tpu.pipeline_mode<synchronous>, transform_indices = @transform_0, window_bounds = array<i64: 2, 512>}, {transform_indices = @transform_1, window_bounds = array<i64: 8, 512>}]} {
    %c8_i32 = arith.constant 8 : i32
    %0 = arith.muli %arg0, %c8_i32 : i32
    %1 = tpu.iota {dimensions = array<i32: 0>} : vector<8x512xi32>
    %2 = vector.broadcast %0 : i32 to vector<8x512xi32>
    %3 = arith.addi %1, %2 : vector<8x512xi32>
    %4 = arith.sitofp %3 : vector<8x512xi32> to vector<8x512xf32>
    %c0 = arith.constant 0 : index
    %c0_0 = arith.constant 0 : index
    %5 = vector.load %arg1[%c0, %c0_0] : memref<2x512xf32, #tpu.memory_space<vmem>>, vector<1x512xf32>
    %6 = vector.broadcast %5 : vector<1x512xf32> to vector<8x512xf32>
    %7 = arith.mulf %4, %6 : vector<8x512xf32>
    %c1 = arith.constant 1 : index
    %c0_1 = arith.constant 0 : index
    %8 = vector.load %arg1[%c1, %c0_1] : memref<2x512xf32, #tpu.memory_space<vmem>>, vector<1x512xf32>
    %9 = vector.broadcast %8 : vector<1x512xf32> to vector<8x512xf32>
    %10 = arith.addf %7, %9 : vector<8x512xf32>
    %c0_2 = arith.constant 0 : index
    %c0_3 = arith.constant 0 : index
    %11 = vector.load %arg2[%c0_2, %c0_3] : memref<8x512xf32, #tpu.memory_space<vmem>>, vector<8x512xf32>
    tpu.vector_store %arg2[%c0_2, %c0_3], %10 {strides = array<i32>} : memref<8x512xf32, #tpu.memory_space<vmem>>, vector<8x512xf32>,
    return
  }
  func.func @transform_0(%arg0: i32) -> (i32, i32) {
    %c0_i32 = arith.constant 0 : i32
    %c0_i32_0 = arith.constant 0 : i32
    %c0_i32_1 = arith.constant 0 : i32
    return %c0_i32, %c0_i32_0 : i32, i32
  }
  func.func @transform_1(%arg0: i32) -> (i32, i32) {
    %c0_i32 = arith.constant 0 : i32
    %c0_i32_0 = arith.constant 0 : i32
    return %arg0, %c0_i32 : i32, i32
  }
}

</mosaic_0001>

<bundles_post_ra>
// kernel: tpu_custom_call.1
= control target key start
LH: loop header
LB: loop body
LE: loop exit
PB: predicated region body
PF: predicated region fallthrough
CT: control target
= control target key end

     0   :  { %6 = vsyncpa [#allocation3], 0  ;;  %s185_s0 = inlined_call_operand.hbm [shape: f32[2,512], index: 0, kind: input, shape index: {}]   ;;  %s186_s1 = inlined_call_operand.hbm [shape: f32[8,512], index: 1, kind: output, shape index: {}]  }
   0x1   :  { %7 = vsyncpa [#allocation4], 0  ;;  %s149_s6 = smov [#allocation2]   ;;  %s101_s10 = scalar_lea.hbm %s185_s0, 128 }
   0x2   :  { %s14_s7 = sshll.u32 %s149_s6, 4  ;;  %p102_p0 = scmp.ne.s32.totalorder %s185_s0, %s101_s10  ;;  %s15_s7 = int_to_ptr.vmem [resolvable:$true] %s14_s7 }
   0x3   :  { %p105_p1 = scmp.lt.u32.totalorder %s101_s10, %s185_s0 }
   0x5   :  { %p107_p2 = pnand %p105_p1, %p102_p0 }
   0x7   :  { %110 = shalt.err (!%p107_p2)
}
   0x8   :  { %s111_s15 = scalar_lea.vmem %s15_s7, 128  ;;  %p116_p4 = scmp.lt.s32.totalorder %s15_s7, %s15_s7 }
   0x9   :  { %p112_p3 = scmp.ne.s32.totalorder %s15_s7, %s111_s15  ;;  %p117_p5 = scmp.lt.s32.totalorder %s111_s15, %s111_s15 }
   0xb   :  { %p118_p6 = por %p117_p5, %p116_p4 }
   0xd   :  { %p119_p7 = pnand %p118_p6, %p112_p3 }
   0xf   :  { %122 = shalt.err (!%p119_p7)
}
  0x10   :  { %17 = dma.hbm_to_vmem [thread:$0]  %s185_s0, 128, %s15_s7, [#allocation3]  }
  0x11   :  { %145 = dma.done.wait [#allocation3], 128  }
  0x12   :  { %146 = vsyncadd [#allocation3], 4294967168  ;;  %v22_v0 = vlaneseq  ;;  %v27_v7 = vld [vmem:[#allocation2] ss:$2 sm:$0xf]  ;;  %s150_s0 = smov [#allocation5]  }
  0x13   :  { %v54_v8 = vld [vmem:[#allocation2 + $0x1] ss:$2 sm:$0xf]  ;;  %s90_s18 = sshll.u32 %s150_s0, 4  ;;  %s91_s18 = int_to_ptr.vmem [resolvable:$true] %s90_s18 }
  0x14   :  { %v23_v1 = vshrl.u32 %v22_v0, 7  ;;  %s123_s19 = scalar_lea.vmem %s91_s18, 512  ;;  %p128_p9 = scmp.lt.s32.totalorder %s91_s18, %s91_s18 }
  0x15   :  { %p124_p8 = scmp.ne.s32.totalorder %s91_s18, %s123_s19  ;;  %p129_p10 = scmp.lt.s32.totalorder %s123_s19, %s123_s19 }
  0x16   :  { %v31_v2 = vsub.s32 0, %v23_v1  ;;  %v35_v3 = vsub.s32 1, %v23_v1  ;;  %v39_v4 = vsub.s32 2, %v23_v1  ;;  %v43_v5 = vsub.s32 3, %v23_v1 }
  0x17   :  { %v26_v6 = vcvt.s32.f32 %v23_v1  ;;  %p130_p11 = por %p129_p10, %p128_p9 }
  0x18   :  { %v32_v9 = vrot.slane %v27_v7, %v31_v2  ;;  %v59_v10 = vrot.slane %v54_v8, %v31_v2  ;;  %v36_v11 = vrot.slane %v27_v7, %v35_v3  ;;  %v63_v12 = vrot.slane %v54_v8, %v35_v3 }
  0x19   :  { %v40_v13 = vrot.slane %v27_v7, %v39_v4  ;;  %v67_v14 = vrot.slane %v54_v8, %v39_v4  ;;  %v44_v15 = vrot.slane %v27_v7, %v43_v5  ;;  %v71_v16 = vrot.slane %v54_v8, %v43_v5  ;;  %p131_p12 = pnand %p130_p11, %p124_p8 }
  0x1a   :  { %v49_v17 = vmul.f32 %v32_v9, %v26_v6  ;;  %v50_v18 = vmul.f32 %v36_v11, %v26_v6 }
  0x1b   :  { %v51_v19 = vmul.f32 %v40_v13, %v26_v6  ;;  %v52_v20 = vmul.f32 %v44_v15, %v26_v6 }
  0x1c   :  { %v76_v21 = vadd.f32 %v59_v10, %v49_v17  ;;  %v77_v22 = vadd.f32 %v63_v12, %v50_v18 }
  0x1d   :  { %v78_v23 = vadd.f32 %v67_v14, %v51_v19  ;;  %v79_v24 = vadd.f32 %v71_v16, %v52_v20 }
  0x1e   :  { %80 = vst [vmem:[#allocation5] sm:$0xff] %v76_v21  ;;  %81 = vst [vmem:[#allocation5 + $0x8] sm:$0xff] %v77_v22 }
  0x1f   :  { %82 = vst [vmem:[#allocation5 + $0x10] sm:$0xff] %v78_v23  ;;  %83 = vst [vmem:[#allocation5 + $0x18] sm:$0xff] %v79_v24 }
  0x20   :  { %134 = shalt.err (!%p131_p12)
}
  0x21   :  { %s135_s22 = scalar_lea.hbm %s186_s1, 512 }
  0x22   :  { %p136_p13 = scmp.ne.s32.totalorder %s186_s1, %s135_s22  ;;  %p139_p0 = scmp.lt.u32.totalorder %s135_s22, %s186_s1 }
  0x24   :  { %p141_p1 = pnand %p139_p0, %p136_p13 }
  0x26   :  { %144 = shalt.err (!%p141_p1)
}
  0x27   :  { %93 = dma.vmem_to_hbm [thread:$0]  %s91_s18, 512, %s186_s1, [#allocation4]  }
  0x28   :  { %147 = dma.done.wait [#allocation4], 512  }
  0x29   :  { %148 = vsyncadd [#allocation4], 4294966784 }
  0x2a   :  { %97 = vsyncpa [#allocation3], 1 }
  0x2b   :  { %98 = vsyncpa [#allocation4], 1 }

</bundles_post_ra>
